<compile_context>
chip_gen: v6e
topology: v6e:2x2x1
jax: 0.10.0
libtpu: 0.0.40
codegen_flags: <defaults>
</compile_context>

<pallas_src>
import jax
import jax.numpy as jnp
from jax.experimental import pallas as pl
from jax.experimental.pallas import tpu as pltpu


def _round_up(a, b):
    return ((a + b - 1) // b) * b


def _cdiv(a, b):
    return -(-a // b)


def _neutral(dtype):
    """Identity element for max() in the given dtype (Python scalar)."""
    if jnp.issubdtype(dtype, jnp.floating):
        return float("-inf")
    return int(jnp.iinfo(dtype).min)


def _choose_tiles(R, S, itemsize):
    """Pick (TR, TS) respecting layout rules and a ~4 MiB tile budget."""
    LANE = 128
    SUB = max(8, 32 // itemsize)              # 8 / 16 / 32 for f32 / bf16 / int8
    if S <= LANE:
        TS = S                                # equal-to-full-dim: allowed
    else:
        TS = min(_round_up(S, LANE), 4096)    # lane-dense, capped
    target = 4 * 1024 * 1024                  # ~4 MiB per input tile
    TR = max(SUB, (target // (TS * itemsize)) // SUB * SUB)
    TR = min(TR, 2048)
    if R > SUB:
        # Keep >= 2 row tiles so the "parallel" axis can shard across TCs.
        TR = min(TR, _round_up(_cdiv(R, 2), SUB))
    TR = min(TR, _round_up(R, SUB))
    TR = max(SUB, (TR // SUB) * SUB)
    return int(TR), int(TS)


def _make_bias(S, W, x0, y0, w, h, k0, nk, TS, dtype):
    """(1, nk*TS) row: dtype-max where the flat index is a valid region element,
    dtype-min elsewhere.  Applied in-kernel with a single jnp.minimum."""
    total = nk * TS
    flat = k0 * TS + jnp.arange(total, dtype=jnp.int32)
    hh = flat // W
    ww = flat % W
    valid = (
        (flat < S)
        & (hh >= y0) & (hh < y0 + h)
        & (ww >= x0) & (ww < x0 + w)
    )
    if jnp.issubdtype(dtype, jnp.floating):
        hi, lo = float("inf"), float("-inf")
    else:
        hi, lo = int(jnp.iinfo(dtype).max), int(jnp.iinfo(dtype).min)
    return jnp.where(valid, hi, lo).astype(dtype).reshape(1, total)


def _make_kernel(TS, FOLD, neutral, use_bias):
    """Row-tiled, spatially-tiled running-max kernel.

    Per step: (optional) one broadcast vmin with the bias row, then a pure-VPU
    tree fold of the TS columns into a (TR, FOLD) lane-dense accumulator.  The
    single cross-lane reduce happens once per row tile (last k step).
    """
    nfold = TS // FOLD

    def body(x_ref, o_ref, acc_ref, bias_ref):
        kk = pl.program_id(1)

        @pl.when(kk == 0)
        def _():
            acc_ref[...] = jnp.full(acc_ref.shape, neutral, acc_ref.dtype)

        xv = x_ref[...]
        if use_bias:
            xv = jnp.minimum(xv, bias_ref[...])       # (1, TS) row broadcast

        # Pure-VPU tree fold over static, lane-aligned 128-wide slices.
        parts = [xv[:, j * FOLD:(j + 1) * FOLD] for j in range(nfold)]
        while len(parts) > 1:
            nxt = []
            for a in range(0, len(parts) - 1, 2):
                nxt.append(jnp.maximum(parts[a], parts[a + 1]))
            if len(parts) % 2:
                nxt.append(parts[-1])
            parts = nxt
        acc_ref[...] = jnp.maximum(acc_ref[...], parts[0])

        @pl.when(kk == pl.num_programs(1) - 1)
        def _():
            o_ref[...] = jnp.max(acc_ref[...], axis=-1, keepdims=True)

    if use_bias:
        def kernel(bias_ref, x_ref, o_ref, acc_ref):
            body(x_ref, o_ref, acc_ref, bias_ref)
    else:
        def kernel(x_ref, o_ref, acc_ref):
            body(x_ref, o_ref, acc_ref, None)
    return kernel


def _rmac_2d(x2d, H, W, x0, y0, w, h):
    """x2d: (R, S=H*W) -> (R, 1) max over the (cropped) spatial domain."""
    R, S = x2d.shape
    dtype = x2d.dtype
    TR, TS = _choose_tiles(R, S, dtype.itemsize)
    FOLD = 128 if TS % 128 == 0 else TS           # accumulator lane width

    # Restrict the reduction grid to spatial blocks overlapping rows [y0, y0+h).
    k0 = (y0 * W) // TS
    k_end = _cdiv((y0 + h) * W, TS)
    nk = k_end - k0
    nr = _cdiv(R, TR)

    full_domain = (x0 == 0 and y0 == 0 and w == W and h == H)
    use_bias = not (full_domain and S % TS == 0)

    neutral = _neutral(dtype)
    kernel = _make_kernel(TS, FOLD, neutral, use_bias)

    in_specs = [pl.BlockSpec((TR, TS), lambda i, k: (i, k + k0))]
    args = (x2d,)
    if use_bias:
        bias = _make_bias(S, W, x0, y0, w, h, k0, nk, TS, dtype)
        in_specs = [pl.BlockSpec((1, TS), lambda i, k: (0, k))] + in_specs
        args = (bias, x2d)

    return pl.pallas_call(
        kernel,
        out_shape=jax.ShapeDtypeStruct((R, 1), dtype),
        grid_spec=pltpu.PrefetchScalarGridSpec(
            num_scalar_prefetch=0,
            grid=(nr, nk),
            in_specs=in_specs,
            # Output block resident across the reduction (last) grid axis.
            out_specs=pl.BlockSpec((TR, 1), lambda i, k: (i, 0)),
            scratch_shapes=[pltpu.VMEM((TR, FOLD), dtype)],
        ),
        compiler_params=pltpu.CompilerParams(
            dimension_semantics=("parallel", "arbitrary"),
            vmem_limit_bytes=32 * 1024 * 1024,
        ),
    )(*args)


def rmac_layer(encs, regions=None):
    """
    :param encs: list of arrays, each (N, C, H, W)
    :param regions: optional list of dicts {"x": int, "y": int, "w": int, "h": int}
                    (static Python ints, matching the PyTorch slicing semantics)
    :return: list of arrays, each (N, C) = max over the (possibly cropped)
             spatial domain
    """
    n = len(encs)
    specs = []
    for i, act_map in enumerate(encs):
        N, C, H, W = act_map.shape
        if regions is not None:
            r = regions[i]
            x0 = max(0, min(int(r["x"]), W))
            y0 = max(0, min(int(r["y"]), H))
            w = max(0, min(int(r["w"]), W - x0))
            h = max(0, min(int(r["h"]), H - y0))
            if w == 0 or h == 0:
                raise ValueError(
                    "RMAC region is empty (h==0 or w==0): max over empty domain"
                )
        else:
            x0, y0, w, h = 0, 0, W, H
        specs.append((H, W, x0, y0, w, h, jnp.dtype(act_map.dtype).name))

    # Batch encodings that share (H, W, region, dtype) into a single pallas_call
    # by concatenating along the (N*C) row axis (amortizes launch cost and
    # gives the parallel row axis more tiles for megacore).
    groups = {}
    for i, key in enumerate(specs):
        groups.setdefault(key, []).append(i)

    outputs = [None] * n
    for key, idxs in groups.items():
        H, W, x0, y0, w, h = key[:6]
        rows = [encs[i].reshape(-1, H * W) for i in idxs]   # contiguous reshape
        x2d = rows[0] if len(rows) == 1 else jnp.concatenate(rows, axis=0)
        m = _rmac_2d(x2d, H, W, x0, y0, w, h)
        off = 0
        for i in idxs:
            N, C = encs[i].shape[0], encs[i].shape[1]
            outputs[i] = m[off:off + N * C].reshape(N, C)
            off += N * C
    return outputs


if __name__ == "__main__":
    key = jax.random.PRNGKey(0)
    k1, k2 = jax.random.split(key)

    # Two encodings at different resolutions, like a list of feature maps.
    enc0 = jax.random.normal(k1, (2, 4, 16, 16), dtype=jnp.float32)
    enc1 = jax.random.normal(k2, (2, 4, 8, 8), dtype=jnp.float32)
    encs = [enc0, enc1]

    regions = [
        {"x": 2, "y": 3, "w": 8, "h": 6},
        {"x": 1, "y": 1, "w": 4, "h": 5},
    ]

    # Full-spatial-domain RMAC.
    outs_full = rmac_layer(encs)
    # Regional RMAC.
    outs_reg = rmac_layer(encs, regions)

    for o in outs_full + outs_reg:
        jax.block_until_ready(o)

    # Correctness check against plain JAX reference.
    for i, e in enumerate(encs):
        ref_full = jnp.max(e.reshape(e.shape[0], e.shape[1], -1), axis=2)
        assert jnp.allclose(outs_full[i], ref_full), "full-domain mismatch"
        r = regions[i]
        cropped = e[:, :, r["y"]:r["y"] + r["h"], r["x"]:r["x"] + r["w"]]
        ref_reg = jnp.max(cropped.reshape(e.shape[0], e.shape[1], -1), axis=2)
        assert jnp.allclose(outs_reg[i], ref_reg), "regional mismatch"

    print("KERNEL_OK")
</pallas_src>

<mosaic_0001>
module attributes {stable_mosaic.version = 11 : i64} {
  func.func @kernel(%arg0: i32, %arg1: i32, %arg2: memref<8x256xf32, #tpu.memory_space<vmem>>, %arg3: memref<8x1xf32, #tpu.memory_space<vmem>>, %arg4: memref<8x128xf32, #tpu.memory_space<vmem>>) attributes {dimension_semantics = [#tpu.dimension_semantics<parallel>, #tpu.dimension_semantics<arbitrary>], iteration_bounds = array<i64: 1, 1>, scalar_prefetch = 0 : i64, scratch_operands = 1 : i64, tpu.core_type = #tpu.core_type<tc>, window_params = [{transform_indices = @transform_0, window_bounds = array<i64: 8, 256>}, {transform_indices = @transform_1, window_bounds = array<i64: 8, 1>}]} {
    %c0_i32 = arith.constant 0 : i32
    %0 = arith.cmpi eq, %arg1, %c0_i32 : i32
    %1 = arith.extui %0 : i1 to i32
    %c0_i32_0 = arith.constant 0 : i32
    %2 = arith.cmpi ne, %1, %c0_i32_0 : i32
    scf.if %2 {
      %cst = arith.constant 0xFF800000 : f32
      %13 = vector.broadcast %cst : f32 to vector<8x128xf32>
      %c0_8 = arith.constant 0 : index
      %c0_9 = arith.constant 0 : index
      %14 = vector.load %arg4[%c0_8, %c0_9] : memref<8x128xf32, #tpu.memory_space<vmem>>, vector<8x128xf32>
      tpu.vector_store %arg4[%c0_8, %c0_9], %13 {strides = array<i32>} : memref<8x128xf32, #tpu.memory_space<vmem>>, vector<8x128xf32>,
    } else {
    }
    %c0 = arith.constant 0 : index
    %c0_1 = arith.constant 0 : index
    %3 = vector.load %arg2[%c0, %c0_1] : memref<8x256xf32, #tpu.memory_space<vmem>>, vector<8x256xf32>
    %4 = vector.extract_strided_slice %3 {offsets = [0, 0], sizes = [8, 128], strides = [1, 1]} : vector<8x256xf32> to vector<8x128xf32>
    %5 = vector.extract_strided_slice %3 {offsets = [0, 128], sizes = [8, 128], strides = [1, 1]} : vector<8x256xf32> to vector<8x128xf32>
    %6 = arith.maximumf %4, %5 : vector<8x128xf32>
    %c0_2 = arith.constant 0 : index
    %c0_3 = arith.constant 0 : index
    %7 = vector.load %arg4[%c0_2, %c0_3] : memref<8x128xf32, #tpu.memory_space<vmem>>, vector<8x128xf32>
    %8 = arith.maximumf %7, %6 : vector<8x128xf32>
    %c0_4 = arith.constant 0 : index
    %c0_5 = arith.constant 0 : index
    %9 = vector.load %arg4[%c0_4, %c0_5] : memref<8x128xf32, #tpu.memory_space<vmem>>, vector<8x128xf32>
    tpu.vector_store %arg4[%c0_4, %c0_5], %8 {strides = array<i32>} : memref<8x128xf32, #tpu.memory_space<vmem>>, vector<8x128xf32>,
    %c0_i32_6 = arith.constant 0 : i32
    %10 = arith.cmpi eq, %arg1, %c0_i32_6 : i32
    %11 = arith.extui %10 : i1 to i32
    %c0_i32_7 = arith.constant 0 : i32
    %12 = arith.cmpi ne, %11, %c0_i32_7 : i32
    scf.if %12 {
      %c0_8 = arith.constant 0 : index
      %c0_9 = arith.constant 0 : index
      %13 = vector.load %arg4[%c0_8, %c0_9] : memref<8x128xf32, #tpu.memory_space<vmem>>, vector<8x128xf32>
      %cst = arith.constant dense<0xFF800000> : vector<8xf32>
      %14 = vector.multi_reduction <maximumf>, %13, %cst [1] : vector<8x128xf32> to vector<8xf32>
      %15 = vector.shape_cast %14 : vector<8xf32> to vector<8x1xf32>
      %c0_10 = arith.constant 0 : index
      %c0_11 = arith.constant 0 : index
      %16 = vector.load %arg3[%c0_10, %c0_11] : memref<8x1xf32, #tpu.memory_space<vmem>>, vector<8x1xf32>
      tpu.vector_store %arg3[%c0_10, %c0_11], %15 {strides = array<i32>} : memref<8x1xf32, #tpu.memory_space<vmem>>, vector<8x1xf32>,
    } else {
    }
    return
  }
  func.func @transform_0(%arg0: i32, %arg1: i32) -> (i32, i32) {
    %c0_i32 = arith.constant 0 : i32
    %0 = arith.addi %arg1, %c0_i32 : i32
    %c0_i32_0 = arith.constant 0 : i32
    return %arg0, %0 : i32, i32
  }
  func.func @transform_1(%arg0: i32, %arg1: i32) -> (i32, i32) {
    %c0_i32 = arith.constant 0 : i32
    %c0_i32_0 = arith.constant 0 : i32
    return %arg0, %c0_i32 : i32, i32
  }
}

</mosaic_0001>

<bundles_post_ra>
// kernel: tpu_custom_call.1
= control target key start
LH: loop header
LB: loop body
LE: loop exit
PB: predicated region body
PF: predicated region fallthrough
CT: control target
= control target key end

     0   :  { %6 = vsyncpa [#allocation4], 0  ;;  %s67_s6 = smov [#allocation3]   ;;  %s84_s0 = inlined_call_operand.hbm [shape: f32[8,256], index: 0, kind: input, shape index: {}]   ;;  %s85_s1 = inlined_call_operand.vmem [shape: f32[8,1], index: 1, kind: output, shape index: {}]  }
   0x1   :  { %s13_s7 = sshll.u32 %s67_s6, 4  ;;  %s14_s7 = int_to_ptr.vmem [resolvable:$true] %s13_s7 }
   0x2   :  { %s53_s8 = scalar_lea.vmem %s14_s7, 256  ;;  %p58_p1 = scmp.lt.s32.totalorder %s14_s7, %s14_s7 }
   0x3   :  { %p54_p0 = scmp.ne.s32.totalorder %s14_s7, %s53_s8  ;;  %p59_p2 = scmp.lt.s32.totalorder %s53_s8, %s53_s8 }
   0x5   :  { %p60_p3 = por %p59_p2, %p58_p1 }
   0x7   :  { %p61_p4 = pnand %p60_p3, %p54_p0 }
   0x9   :  { %64 = shalt.err (!%p61_p4)
}
   0xa   :  { %16 = dma.hbm_to_vmem [thread:$0]  %s84_s0, 256, %s14_s7, [#allocation4]  }
   0xb   :  { %65 = dma.done.wait [#allocation4], 256  }
   0xc   :  { %66 = vsyncadd [#allocation4], 4294967040  ;;  %v25_v0 = vld [vmem:[#allocation3] sm:$0xff]  ;;  %v26_v1 = vld [vmem:[#allocation3 + $0x8] sm:$0xff]  ;;  %vm37_vm0 = vcmask 7168  }
   0xd   :  { %v27_v2 = vmax.f32 %v25_v0, %v26_v1 }
   0xf   :  { %35 = vmax.xlane.f32.xlu0 %v27_v2 }
  0x98   :  { %v36_v3 = vpop.xlane.xlu0 %35 }
  0x99   :  { %38 = vst.msk [vmem:[%s85_s1] sm:$0xff] %vm37_vm0, %v36_v3 }
  0x9a   :  { %43 = vsyncpa [#allocation4], 1 }

</bundles_post_ra>
